<compile_context>
chip_gen: v5e
topology: v5e:2x2
jax: 0.10.0
libtpu: 0.0.40
codegen_flags: <defaults>
</compile_context>

<pallas_src>
import functools

import jax
import jax.numpy as jnp
from jax import lax
from jax.experimental import pallas as pl
from jax.experimental.pallas import tpu as pltpu

BN_EPS = 1e-5
LANE = 128
SUBLANE = 8
VMEM_LIMIT_BYTES = 48 * 1024 * 1024   # <= v7x 64 MiB physical; >> v5e 16 MiB default
VMEM_TILE_BUDGET = 36 * 1024 * 1024   # tile-picker budget (headroom under the limit)
TARGET_BLOCK_ROWS = 1024              # amortize fixed per-grid-step overhead


def _round_up(x, m):
    return (x + m - 1) // m * m


# --------------------------- Pallas kernels ---------------------------------

def _conv_stats_kernel(x_ref, w_ref, y_ref, stats_ref, *, w_cols, rows, fr, k):
    """3x3 circular conv (kw taps pre-folded into channels) + batch stats.

    x_ref:     (k*fr, 3*Cin)  k H-halo'd slabs, flattened to (y, x) rows; the 3
                              kw taps live in the channel dim, so the conv is 3
                              dy-shifted matmuls with sublane-aligned shifts.
    w_ref:     (3, 3*Cin, Cp) per-dy weights, out-channels zero-padded to 128.
    y_ref:     (k*rows, Cp)   raw conv output (lane-dense, unmasked stores).
    stats_ref: (2, Cp)        resident per-core accumulator: [sum; sum(x^2)].
    """
    cp = y_ref.shape[-1]
    tot = jnp.zeros((2, cp), jnp.float32)

    for j in range(k):                       # static unroll over slabs in the block
        base = j * fr
        # MXU accumulation stays inside the dot chain: only 2 VPU adds remain.
        acc = jnp.dot(x_ref[base:base + rows, :], w_ref[0],
                      preferred_element_type=jnp.float32)
        for dy in (1, 2):
            s = base + dy * w_cols           # sublane-aligned when W % 8 == 0
            acc = acc + jnp.dot(x_ref[s:s + rows, :], w_ref[dy],
                                preferred_element_type=jnp.float32)
        y_ref[j * rows:(j + 1) * rows, :] = acc

        # single-pass batch stats; every row is valid (no wrap-junk columns).
        # XLU column-reduce is off the critical path now that the VPU adds and
        # the mask multiply are gone.
        tile_sum = jnp.sum(acc, axis=0, keepdims=True)
        tile_ssq = jnp.sum(acc * acc, axis=0, keepdims=True)
        tot = tot + jnp.concatenate([tile_sum, tile_ssq], axis=0)

    @pl.when(pl.program_id(1) == 0)
    def _init():
        stats_ref[...] = jnp.zeros_like(stats_ref)

    stats_ref[...] += tot                    # one stacked (2, Cp) update


def _bn_relu_kernel(y_ref, scale_ref, shift_ref, o_ref):
    """y * scale + shift, ReLU.  BN affine + batch stats folded into scale/shift."""
    o_ref[...] = jnp.maximum(
        y_ref[...] * scale_ref[...] + shift_ref[...], 0.0).astype(o_ref.dtype)


# --------------------------- tiling ------------------------------------------

def _block_bytes(th, w, kc, cp, k):
    """Lane-padding-aware VMEM footprint of one pass-1 grid-step block (f32)."""
    rows = th * w
    fr = _round_up((th + 2) * w, SUBLANE)
    x_bytes = 2 * 4 * k * fr * _round_up(kc, LANE)       # double-buffered input
    y_bytes = 2 * 4 * k * rows * cp                      # double-buffered output
    w_bytes = 2 * 4 * 3 * _round_up(kc, SUBLANE) * cp    # weights (full block)
    s_bytes = 2 * 4 * SUBLANE * cp                       # stats block
    tmp_bytes = 2 * 4 * rows * cp                        # in-kernel acc temporaries
    return x_bytes + y_bytes + w_bytes + s_bytes + tmp_bytes


def _pick_tiling(n, h, w, kc, cp):
    """Pick (tile height, slabs-per-block, megacore split) under the VMEM budget."""
    best_th = None
    for th in range(1, h + 1):
        if h % th:
            continue
        if (th * w) % SUBLANE:               # rows must be sublane-aligned
            continue
        if _block_bytes(th, w, kc, cp, 1) <= VMEM_TILE_BUDGET:
            best_th = th
    if best_th is None:
        raise ValueError(f"no valid tile height for H={h}, W={w}, 3*Cin={kc}")
    th = best_th
    nt = h // th
    g_tiles = n * nt
    rows = th * w

    ncores = 2 if g_tiles % 2 == 0 else 1    # v7x megacore; harmless on 1-TC parts
    tpc = g_tiles // ncores

    k = 1                                    # slabs per grid-step block
    for cand in range(min(tpc, 8), 1, -1):
        if tpc % cand:
            continue
        if cand * rows > max(TARGET_BLOCK_ROWS, rows):
            continue
        if _block_bytes(th, w, kc, cp, cand) <= VMEM_TILE_BUDGET:
            k = cand
            break
    return th, nt, g_tiles, ncores, tpc, k


# --------------------------- wrappers ----------------------------------------

def _conv_stats_pass(x_nhwc, weight):
    """Raw 3x3 circular conv (bias=False) + per-channel batch sum / sum-of-squares.

    x_nhwc: (N, H, W, Cin) f32; weight: (Cout, Cin, 3, 3) PyTorch layout.
    Returns (y2d, stats, geom): y2d is (g_tiles*rows, Cp) raw conv output
    (Cp = Cout padded to 128 lanes), stats is (2, Cp) [sum; sum(x^2)].
    """
    n, h, w, cin = x_nhwc.shape
    cout = weight.shape[0]
    cp = _round_up(cout, LANE)
    kc = 3 * cin                              # kw taps folded into channels
    th, nt, g_tiles, ncores, tpc, k = _pick_tiling(n, h, w, kc, cp)
    rows = th * w
    fr = _round_up((th + 2) * w, SUBLANE)
    bpc = tpc // k                            # grid blocks per core

    # --- glue: circular pad, fold kw taps into channels, H-halo slabs --------
    # (this is the copy into which XLA also fuses the previous stage's BN+ReLU)
    xp = jnp.pad(x_nhwc.astype(jnp.float32), ((0, 0), (1, 1), (1, 1), (0, 0)),
                 mode="wrap")                                   # (N, H+2, W+2, Cin)
    xcat = jnp.concatenate([xp[:, :, t:t + w, :] for t in range(3)],
                           axis=-1)                             # (N, H+2, W, 3Cin)
    slabs = jnp.stack([xcat[:, t * th:t * th + th + 2] for t in range(nt)],
                      axis=1)                                   # (N, nt, th+2, W, 3Cin)
    flat = slabs.reshape(g_tiles, (th + 2) * w, kc)
    if fr != (th + 2) * w:
        flat = jnp.pad(flat, ((0, 0), (0, fr - (th + 2) * w), (0, 0)))
    x_tiles = flat.reshape(g_tiles * fr, kc)

    # weights (Cout, Cin, 3, 3) -> (3[dy], 3*Cin, Cp)
    wt = jnp.transpose(weight, (2, 3, 1, 0)).reshape(3, kc, cout).astype(jnp.float32)
    wt = jnp.pad(wt, ((0, 0), (0, 0), (0, cp - cout)))

    kern = functools.partial(_conv_stats_kernel, w_cols=w, rows=rows, fr=fr, k=k)
    y, stats = pl.pallas_call(
        kern,
        out_shape=(jax.ShapeDtypeStruct((g_tiles * rows, cp), jnp.float32),
                   jax.ShapeDtypeStruct((2, ncores * cp), jnp.float32)),
        grid=(ncores, bpc),
        in_specs=[
            pl.BlockSpec((k * fr, kc), lambda c, i: (c * bpc + i, 0)),
            pl.BlockSpec((3, kc, cp), lambda c, i: (0, 0, 0)),
        ],
        out_specs=(
            pl.BlockSpec((k * rows, cp), lambda c, i: (c * bpc + i, 0)),
            pl.BlockSpec((2, cp), lambda c, i: (0, c)),   # per-core partial stats
        ),
        compiler_params=pltpu.CompilerParams(
            dimension_semantics=("parallel", "arbitrary"),
            vmem_limit_bytes=VMEM_LIMIT_BYTES),
    )(x_tiles, wt)

    stats = stats.reshape(2, ncores, cp).sum(axis=1)      # reduce core partials
    geom = dict(n=n, h=h, w=w, nt=nt, th=th, rows=rows, g_tiles=g_tiles,
                cp=cp, cout=cout)
    return y, stats, geom


def _fold_bn(stats, gamma, beta, count, cp):
    """Fold BN batch stats + affine into per-channel scale / shift (padded to Cp)."""
    cout = gamma.shape[0]
    mean = stats[0] / count
    var = jnp.maximum(stats[1] / count - mean * mean, 0.0)   # E[x^2] - E[x]^2
    inv = lax.rsqrt(var + BN_EPS)
    gp = jnp.pad(gamma.astype(jnp.float32), (0, cp - cout))
    bp = jnp.pad(beta.astype(jnp.float32), (0, cp - cout))
    scale = gp * inv
    shift = bp - mean * scale
    return scale, shift                                      # each (Cp,)


def _y2d_to_nhwc(y2d, g):
    return y2d.reshape(g["n"], g["nt"], g["th"], g["w"], g["cp"]).reshape(
        g["n"], g["h"], g["w"], g["cp"])


def _bn_relu_pass(y2d, scale, shift):
    """Standalone BN+ReLU streaming pass (final stage only): big lane-dense blocks."""
    total_rows, cp = y2d.shape
    max_rows = min(total_rows, 8192, VMEM_TILE_BUDGET // (16 * cp))
    r2 = 8
    for cand in range(8, max_rows + 1, 8):
        if total_rows % cand == 0:
            r2 = cand
    return pl.pallas_call(
        _bn_relu_kernel,
        out_shape=jax.ShapeDtypeStruct((total_rows, cp), jnp.float32),
        grid=(total_rows // r2,),
        in_specs=[
            pl.BlockSpec((r2, cp), lambda i: (i, 0)),
            pl.BlockSpec((1, cp), lambda i: (0, 0)),
            pl.BlockSpec((1, cp), lambda i: (0, 0)),
        ],
        out_specs=pl.BlockSpec((r2, cp), lambda i: (i, 0)),
        compiler_params=pltpu.CompilerParams(
            dimension_semantics=("parallel",),
            vmem_limit_bytes=VMEM_LIMIT_BYTES),
    )(y2d, scale.reshape(1, cp), shift.reshape(1, cp))


def _maxpool2x2_nchw(x):
    # 2x2 / stride-2 max pool (XLA glue; trivial next to the conv stages).
    return jnp.maximum(
        jnp.maximum(x[:, :, 0::2, 0::2], x[:, :, 0::2, 1::2]),
        jnp.maximum(x[:, :, 1::2, 0::2], x[:, :, 1::2, 1::2]))


def down_forward(x_nchw, params):
    """Down: MaxPool2d(2) -> DoubleConv.  (N, Cin, H, W) -> (N, Cout, H/2, W/2)."""
    x = _maxpool2x2_nchw(x_nchw)
    x = jnp.transpose(x, (0, 2, 3, 1))                       # NCHW -> NHWC
    n, h, w, _ = x.shape
    cnt = jnp.float32(n * h * w)

    # stage 1: conv + stats only (BN/ReLU deferred, fused into stage-2 prep)
    y1, stats1, geom1 = _conv_stats_pass(x, params["w1"])
    cmid = params["w1"].shape[0]
    scale1, shift1 = _fold_bn(stats1, params["g1"], params["b1"], cnt, geom1["cp"])

    # stage 2: BN1 + ReLU fused (by XLA) into the slab-prep copy of stage 2
    a1 = _y2d_to_nhwc(y1, geom1)[..., :cmid]
    a1 = jnp.maximum(a1 * scale1[:cmid] + shift1[:cmid], 0.0)
    y2, stats2, geom2 = _conv_stats_pass(a1, params["w2"])
    cout = params["w2"].shape[0]
    scale2, shift2 = _fold_bn(stats2, params["g2"], params["b2"], cnt, geom2["cp"])

    # final BN + ReLU as a lane-dense streaming Pallas pass
    act2 = _bn_relu_pass(y2, scale2, shift2)
    out = _y2d_to_nhwc(act2, geom2)[..., :cout]
    return jnp.transpose(out, (0, 3, 1, 2))                  # NHWC -> NCHW


# --------------------------- pure-JAX reference ------------------------------

def _down_reference(x_nchw, params):
    x = lax.reduce_window(x_nchw, -jnp.inf, lax.max,
                          (1, 1, 2, 2), (1, 1, 2, 2), "VALID")
    x = jnp.transpose(x, (0, 2, 3, 1))
    for wk, gk, bk in (("w1", "g1", "b1"), ("w2", "g2", "b2")):
        wgt, g, b = params[wk], params[gk], params[bk]
        xpad = jnp.pad(x, ((0, 0), (1, 1), (1, 1), (0, 0)), mode="wrap")
        y = lax.conv_general_dilated(
            xpad, jnp.transpose(wgt, (2, 3, 1, 0)), (1, 1), "VALID",
            dimension_numbers=("NHWC", "HWIO", "NHWC"),
            precision=lax.Precision.HIGHEST)
        mean = jnp.mean(y, axis=(0, 1, 2), keepdims=True)
        var = jnp.mean((y - mean) ** 2, axis=(0, 1, 2), keepdims=True)
        y = (y - mean) * lax.rsqrt(var + BN_EPS) * g.reshape(1, 1, 1, -1) \
            + b.reshape(1, 1, 1, -1)
        x = jnp.maximum(y, 0.0)
    return jnp.transpose(x, (0, 3, 1, 2))


if __name__ == "__main__":
    # Down(in_channels=4, out_channels=8): MaxPool2d(2) -> DoubleConv(4, 8)
    N, CIN, H, W = 2, 4, 16, 16
    CMID = COUT = 8

    key = jax.random.PRNGKey(0)
    k1, k2, kx = jax.random.split(key, 3)
    params = {
        # conv weights, PyTorch layout (Cout, Cin, kH, kW), bias=False
        "w1": 0.1 * jax.random.normal(k1, (CMID, CIN, 3, 3), jnp.float32),
        "w2": 0.1 * jax.random.normal(k2, (COUT, CMID, 3, 3), jnp.float32),
        # BatchNorm2d default init: weight=1, bias=0
        "g1": jnp.ones((CMID,), jnp.float32),
        "b1": jnp.zeros((CMID,), jnp.float32),
        "g2": jnp.ones((COUT,), jnp.float32),
        "b2": jnp.zeros((COUT,), jnp.float32),
    }
    x = jax.random.normal(kx, (N, CIN, H, W), jnp.float32)

    out = jax.block_until_ready(jax.jit(down_forward)(x, params))
    ref = jax.block_until_ready(_down_reference(x, params))

    assert out.shape == (N, COUT, H // 2, W // 2), out.shape
    max_err = float(jnp.max(jnp.abs(out - ref)))
    assert jnp.allclose(out, ref, rtol=1e-3, atol=1e-3), max_err
    print("KERNEL_OK")
</pallas_src>

<mosaic_0001>
module attributes {stable_mosaic.version = 11 : i64} {
  func.func @_conv_stats_kernel(%arg0: i32, %arg1: i32, %arg2: memref<80x12xf32, #tpu.memory_space<vmem>>, %arg3: memref<3x12x128xf32, #tpu.memory_space<vmem>>, %arg4: memref<64x128xf32, #tpu.memory_space<vmem>>, %arg5: memref<2x128xf32, #tpu.memory_space<vmem>>) attributes {dimension_semantics = [#tpu.dimension_semantics<parallel>, #tpu.dimension_semantics<arbitrary>], iteration_bounds = array<i64: 2, 1>, scalar_prefetch = 0 : i64, scratch_operands = 0 : i64, tpu.core_type = #tpu.core_type<tc>, window_params = [{transform_indices = @transform_0, window_bounds = array<i64: 80, 12>}, {pipeline_mode = #tpu.pipeline_mode<synchronous>, transform_indices = @transform_1, window_bounds = array<i64: 3, 12, 128>}, {transform_indices = @transform_2, window_bounds = array<i64: 64, 128>}, {transform_indices = @transform_3, window_bounds = array<i64: 2, 128>}]} {
    %cst = arith.constant 0.000000e+00 : f32
    %0 = vector.broadcast %cst : f32 to vector<2x128xf32>
    %c0 = arith.constant 0 : index
    %c0_0 = arith.constant 0 : index
    %1 = vector.load %arg2[%c0, %c0_0] : memref<80x12xf32, #tpu.memory_space<vmem>>, vector<64x12xf32>
    %c0_1 = arith.constant 0 : index
    %c0_2 = arith.constant 0 : index
    %c0_3 = arith.constant 0 : index
    %2 = vector.load %arg3[%c0_1, %c0_2, %c0_3] : memref<3x12x128xf32, #tpu.memory_space<vmem>>, vector<1x12x128xf32>
    %3 = vector.shape_cast %2 : vector<1x12x128xf32> to vector<12x128xf32>
    %cst_4 = arith.constant dense<0.000000e+00> : vector<64x128xf32>
    %4 = tpu.matmul %1, %3, %cst_4 {dimension_numbers = #tpu.dot_dimension_numbers<[1], [0], [0], [1], [0, 0, 1, 1], [], []>} : vector<64x12xf32>, vector<12x128xf32>, vector<64x128xf32> -> vector<64x128xf32>
    %c8 = arith.constant 8 : index
    %c0_5 = arith.constant 0 : index
    %5 = vector.load %arg2[%c8, %c0_5] : memref<80x12xf32, #tpu.memory_space<vmem>>, vector<64x12xf32>
    %c1 = arith.constant 1 : index
    %c0_6 = arith.constant 0 : index
    %c0_7 = arith.constant 0 : index
    %6 = vector.load %arg3[%c1, %c0_6, %c0_7] : memref<3x12x128xf32, #tpu.memory_space<vmem>>, vector<1x12x128xf32>
    %7 = vector.shape_cast %6 : vector<1x12x128xf32> to vector<12x128xf32>
    %cst_8 = arith.constant dense<0.000000e+00> : vector<64x128xf32>
    %8 = tpu.matmul %5, %7, %cst_8 {dimension_numbers = #tpu.dot_dimension_numbers<[1], [0], [0], [1], [0, 0, 1, 1], [], []>} : vector<64x12xf32>, vector<12x128xf32>, vector<64x128xf32> -> vector<64x128xf32>
    %9 = arith.addf %4, %8 : vector<64x128xf32>
    %c16 = arith.constant 16 : index
    %c0_9 = arith.constant 0 : index
    %10 = vector.load %arg2[%c16, %c0_9] : memref<80x12xf32, #tpu.memory_space<vmem>>, vector<64x12xf32>
    %c2 = arith.constant 2 : index
    %c0_10 = arith.constant 0 : index
    %c0_11 = arith.constant 0 : index
    %11 = vector.load %arg3[%c2, %c0_10, %c0_11] : memref<3x12x128xf32, #tpu.memory_space<vmem>>, vector<1x12x128xf32>
    %12 = vector.shape_cast %11 : vector<1x12x128xf32> to vector<12x128xf32>
    %cst_12 = arith.constant dense<0.000000e+00> : vector<64x128xf32>
    %13 = tpu.matmul %10, %12, %cst_12 {dimension_numbers = #tpu.dot_dimension_numbers<[1], [0], [0], [1], [0, 0, 1, 1], [], []>} : vector<64x12xf32>, vector<12x128xf32>, vector<64x128xf32> -> vector<64x128xf32>
    %14 = arith.addf %9, %13 : vector<64x128xf32>
    %c0_13 = arith.constant 0 : index
    %c0_14 = arith.constant 0 : index
    %15 = vector.load %arg4[%c0_13, %c0_14] : memref<64x128xf32, #tpu.memory_space<vmem>>, vector<64x128xf32>
    tpu.vector_store %arg4[%c0_13, %c0_14], %14 {strides = array<i32>} : memref<64x128xf32, #tpu.memory_space<vmem>>, vector<64x128xf32>,
    %cst_15 = arith.constant dense<0.000000e+00> : vector<128xf32>
    %16 = vector.multi_reduction <add>, %14, %cst_15 [0] : vector<64x128xf32> to vector<128xf32>
    %17 = vector.shape_cast %16 : vector<128xf32> to vector<1x128xf32>
    %18 = arith.mulf %14, %14 : vector<64x128xf32>
    %cst_16 = arith.constant dense<0.000000e+00> : vector<128xf32>
    %19 = vector.multi_reduction <add>, %18, %cst_16 [0] : vector<64x128xf32> to vector<128xf32>
    %20 = vector.shape_cast %19 : vector<128xf32> to vector<1x128xf32>
    %21 = tpu.concatenate %17, %20 in 0 : vector<1x128xf32>, vector<1x128xf32> -> vector<2x128xf32>
    %22 = arith.addf %0, %21 : vector<2x128xf32>
    %c0_i32 = arith.constant 0 : i32
    %23 = arith.cmpi eq, %arg1, %c0_i32 : i32
    %24 = arith.extui %23 : i1 to i32
    %c0_i32_17 = arith.constant 0 : i32
    %25 = arith.cmpi ne, %24, %c0_i32_17 : i32
    scf.if %25 {
      %cst_22 = arith.constant 0.000000e+00 : f32
      %29 = vector.broadcast %cst_22 : f32 to vector<2x128xf32>
      %c0_23 = arith.constant 0 : index
      %c0_24 = arith.constant 0 : index
      %30 = vector.load %arg5[%c0_23, %c0_24] : memref<2x128xf32, #tpu.memory_space<vmem>>, vector<2x128xf32>
      tpu.vector_store %arg5[%c0_23, %c0_24], %29 {strides = array<i32>} : memref<2x128xf32, #tpu.memory_space<vmem>>, vector<2x128xf32>,
    } else {
    }
    %c0_18 = arith.constant 0 : index
    %c0_19 = arith.constant 0 : index
    %26 = vector.load %arg5[%c0_18, %c0_19] : memref<2x128xf32, #tpu.memory_space<vmem>>, vector<2x128xf32>
    %27 = arith.addf %26, %22 : vector<2x128xf32>
    %c0_20 = arith.constant 0 : index
    %c0_21 = arith.constant 0 : index
    %28 = vector.load %arg5[%c0_20, %c0_21] : memref<2x128xf32, #tpu.memory_space<vmem>>, vector<2x128xf32>
    tpu.vector_store %arg5[%c0_20, %c0_21], %27 {strides = array<i32>} : memref<2x128xf32, #tpu.memory_space<vmem>>, vector<2x128xf32>,
    return
  }
  func.func @transform_0(%arg0: i32, %arg1: i32) -> (i32, i32) {
    %c1_i32 = arith.constant 1 : i32
    %0 = arith.muli %arg0, %c1_i32 : i32
    %1 = arith.addi %0, %arg1 : i32
    %c0_i32 = arith.constant 0 : i32
    %c0_i32_0 = arith.constant 0 : i32
    return %1, %c0_i32 : i32, i32
  }
  func.func @transform_1(%arg0: i32, %arg1: i32) -> (i32, i32, i32) {
    %c0_i32 = arith.constant 0 : i32
    %c0_i32_0 = arith.constant 0 : i32
    %c0_i32_1 = arith.constant 0 : i32
    %c0_i32_2 = arith.constant 0 : i32
    return %c0_i32, %c0_i32_0, %c0_i32_1 : i32, i32, i32
  }
  func.func @transform_2(%arg0: i32, %arg1: i32) -> (i32, i32) {
    %c1_i32 = arith.constant 1 : i32
    %0 = arith.muli %arg0, %c1_i32 : i32
    %1 = arith.addi %0, %arg1 : i32
    %c0_i32 = arith.constant 0 : i32
    %c0_i32_0 = arith.constant 0 : i32
    return %1, %c0_i32 : i32, i32
  }
  func.func @transform_3(%arg0: i32, %arg1: i32) -> (i32, i32) {
    %c0_i32 = arith.constant 0 : i32
    %c0_i32_0 = arith.constant 0 : i32
    return %c0_i32, %arg0 : i32, i32
  }
}

module attributes {stable_mosaic.version = 11 : i64} {
  func.func @_bn_relu_kernel(%arg0: i32, %arg1: memref<128x128xf32, #tpu.memory_space<vmem>>, %arg2: memref<1x128xf32, #tpu.memory_space<vmem>>, %arg3: memref<1x128xf32, #tpu.memory_space<vmem>>, %arg4: memref<128x128xf32, #tpu.memory_space<vmem>>) attributes {dimension_semantics = [#tpu.dimension_semantics<parallel>], iteration_bounds = array<i64: 1>, scalar_prefetch = 0 : i64, scratch_operands = 0 : i64, tpu.core_type = #tpu.core_type<tc>, window_params = [{transform_indices = @transform_0, window_bounds = array<i64: 128, 128>}, {pipeline_mode = #tpu.pipeline_mode<synchronous>, transform_indices = @transform_1, window_bounds = array<i64: 1, 128>}, {pipeline_mode = #tpu.pipeline_mode<synchronous>, transform_indices = @transform_2, window_bounds = array<i64: 1, 128>}, {transform_indices = @transform_3, window_bounds = array<i64: 128, 128>}]} {
    %c0 = arith.constant 0 : index
    %c0_0 = arith.constant 0 : index
    %0 = vector.load %arg1[%c0, %c0_0] : memref<128x128xf32, #tpu.memory_space<vmem>>, vector<128x128xf32>
    %c0_1 = arith.constant 0 : index
    %c0_2 = arith.constant 0 : index
    %1 = vector.load %arg2[%c0_1, %c0_2] : memref<1x128xf32, #tpu.memory_space<vmem>>, vector<1x128xf32>
    %2 = vector.broadcast %1 : vector<1x128xf32> to vector<128x128xf32>
    %3 = arith.mulf %0, %2 : vector<128x128xf32>
    %c0_3 = arith.constant 0 : index
    %c0_4 = arith.constant 0 : index
    %4 = vector.load %arg3[%c0_3, %c0_4] : memref<1x128xf32, #tpu.memory_space<vmem>>, vector<1x128xf32>
    %5 = vector.broadcast %4 : vector<1x128xf32> to vector<128x128xf32>
    %6 = arith.addf %3, %5 : vector<128x128xf32>
    %cst = arith.constant 0.000000e+00 : f32
    %7 = vector.broadcast %cst : f32 to vector<128x128xf32>
    %8 = arith.maximumf %6, %7 : vector<128x128xf32>
    %c0_5 = arith.constant 0 : index
    %c0_6 = arith.constant 0 : index
    %9 = vector.load %arg4[%c0_5, %c0_6] : memref<128x128xf32, #tpu.memory_space<vmem>>, vector<128x128xf32>
    tpu.vector_store %arg4[%c0_5, %c0_6], %8 {strides = array<i32>} : memref<128x128xf32, #tpu.memory_space<vmem>>, vector<128x128xf32>,
    return
  }
  func.func @transform_0(%arg0: i32) -> (i32, i32) {
    %c0_i32 = arith.constant 0 : i32
    %c0_i32_0 = arith.constant 0 : i32
    return %arg0, %c0_i32 : i32, i32
  }
  func.func @transform_1(%arg0: i32) -> (i32, i32) {
    %c0_i32 = arith.constant 0 : i32
    %c0_i32_0 = arith.constant 0 : i32
    %c0_i32_1 = arith.constant 0 : i32
    return %c0_i32, %c0_i32_0 : i32, i32
  }
  func.func @transform_2(%arg0: i32) -> (i32, i32) {
    %c0_i32 = arith.constant 0 : i32
    %c0_i32_0 = arith.constant 0 : i32
    %c0_i32_1 = arith.constant 0 : i32
    return %c0_i32, %c0_i32_0 : i32, i32
  }
  func.func @transform_3(%arg0: i32) -> (i32, i32) {
    %c0_i32 = arith.constant 0 : i32
    %c0_i32_0 = arith.constant 0 : i32
    return %arg0, %c0_i32 : i32, i32
  }
}

module attributes {stable_mosaic.version = 11 : i64} {
  func.func @_conv_stats_kernel(%arg0: i32, %arg1: i32, %arg2: memref<80x24xf32, #tpu.memory_space<vmem>>, %arg3: memref<3x24x128xf32, #tpu.memory_space<vmem>>, %arg4: memref<64x128xf32, #tpu.memory_space<vmem>>, %arg5: memref<2x128xf32, #tpu.memory_space<vmem>>) attributes {dimension_semantics = [#tpu.dimension_semantics<parallel>, #tpu.dimension_semantics<arbitrary>], iteration_bounds = array<i64: 2, 1>, scalar_prefetch = 0 : i64, scratch_operands = 0 : i64, tpu.core_type = #tpu.core_type<tc>, window_params = [{transform_indices = @transform_0, window_bounds = array<i64: 80, 24>}, {pipeline_mode = #tpu.pipeline_mode<synchronous>, transform_indices = @transform_1, window_bounds = array<i64: 3, 24, 128>}, {transform_indices = @transform_2, window_bounds = array<i64: 64, 128>}, {transform_indices = @transform_3, window_bounds = array<i64: 2, 128>}]} {
    %cst = arith.constant 0.000000e+00 : f32
    %0 = vector.broadcast %cst : f32 to vector<2x128xf32>
    %c0 = arith.constant 0 : index
    %c0_0 = arith.constant 0 : index
    %1 = vector.load %arg2[%c0, %c0_0] : memref<80x24xf32, #tpu.memory_space<vmem>>, vector<64x24xf32>
    %c0_1 = arith.constant 0 : index
    %c0_2 = arith.constant 0 : index
    %c0_3 = arith.constant 0 : index
    %2 = vector.load %arg3[%c0_1, %c0_2, %c0_3] : memref<3x24x128xf32, #tpu.memory_space<vmem>>, vector<1x24x128xf32>
    %3 = vector.shape_cast %2 : vector<1x24x128xf32> to vector<24x128xf32>
    %cst_4 = arith.constant dense<0.000000e+00> : vector<64x128xf32>
    %4 = tpu.matmul %1, %3, %cst_4 {dimension_numbers = #tpu.dot_dimension_numbers<[1], [0], [0], [1], [0, 0, 1, 1], [], []>} : vector<64x24xf32>, vector<24x128xf32>, vector<64x128xf32> -> vector<64x128xf32>
    %c8 = arith.constant 8 : index
    %c0_5 = arith.constant 0 : index
    %5 = vector.load %arg2[%c8, %c0_5] : memref<80x24xf32, #tpu.memory_space<vmem>>, vector<64x24xf32>
    %c1 = arith.constant 1 : index
    %c0_6 = arith.constant 0 : index
    %c0_7 = arith.constant 0 : index
    %6 = vector.load %arg3[%c1, %c0_6, %c0_7] : memref<3x24x128xf32, #tpu.memory_space<vmem>>, vector<1x24x128xf32>
    %7 = vector.shape_cast %6 : vector<1x24x128xf32> to vector<24x128xf32>
    %cst_8 = arith.constant dense<0.000000e+00> : vector<64x128xf32>
    %8 = tpu.matmul %5, %7, %cst_8 {dimension_numbers = #tpu.dot_dimension_numbers<[1], [0], [0], [1], [0, 0, 1, 1], [], []>} : vector<64x24xf32>, vector<24x128xf32>, vector<64x128xf32> -> vector<64x128xf32>
    %9 = arith.addf %4, %8 : vector<64x128xf32>
    %c16 = arith.constant 16 : index
    %c0_9 = arith.constant 0 : index
    %10 = vector.load %arg2[%c16, %c0_9] : memref<80x24xf32, #tpu.memory_space<vmem>>, vector<64x24xf32>
    %c2 = arith.constant 2 : index
    %c0_10 = arith.constant 0 : index
    %c0_11 = arith.constant 0 : index
    %11 = vector.load %arg3[%c2, %c0_10, %c0_11] : memref<3x24x128xf32, #tpu.memory_space<vmem>>, vector<1x24x128xf32>
    %12 = vector.shape_cast %11 : vector<1x24x128xf32> to vector<24x128xf32>
    %cst_12 = arith.constant dense<0.000000e+00> : vector<64x128xf32>
    %13 = tpu.matmul %10, %12, %cst_12 {dimension_numbers = #tpu.dot_dimension_numbers<[1], [0], [0], [1], [0, 0, 1, 1], [], []>} : vector<64x24xf32>, vector<24x128xf32>, vector<64x128xf32> -> vector<64x128xf32>
    %14 = arith.addf %9, %13 : vector<64x128xf32>
    %c0_13 = arith.constant 0 : index
    %c0_14 = arith.constant 0 : index
    %15 = vector.load %arg4[%c0_13, %c0_14] : memref<64x128xf32, #tpu.memory_space<vmem>>, vector<64x128xf32>
    tpu.vector_store %arg4[%c0_13, %c0_14], %14 {strides = array<i32>} : memref<64x128xf32, #tpu.memory_space<vmem>>, vector<64x128xf32>,
    %cst_15 = arith.constant dense<0.000000e+00> : vector<128xf32>
    %16 = vector.multi_reduction <add>, %14, %cst_15 [0] : vector<64x128xf32> to vector<128xf32>
    %17 = vector.shape_cast %16 : vector<128xf32> to vector<1x128xf32>
    %18 = arith.mulf %14, %14 : vector<64x128xf32>
    %cst_16 = arith.constant dense<0.000000e+00> : vector<128xf32>
    %19 = vector.multi_reduction <add>, %18, %cst_16 [0] : vector<64x128xf32> to vector<128xf32>
    %20 = vector.shape_cast %19 : vector<128xf32> to vector<1x128xf32>
    %21 = tpu.concatenate %17, %20 in 0 : vector<1x128xf32>, vector<1x128xf32> -> vector<2x128xf32>
    %22 = arith.addf %0, %21 : vector<2x128xf32>
    %c0_i32 = arith.constant 0 : i32
    %23 = arith.cmpi eq, %arg1, %c0_i32 : i32
    %24 = arith.extui %23 : i1 to i32
    %c0_i32_17 = arith.constant 0 : i32
    %25 = arith.cmpi ne, %24, %c0_i32_17 : i32
    scf.if %25 {
      %cst_22 = arith.constant 0.000000e+00 : f32
      %29 = vector.broadcast %cst_22 : f32 to vector<2x128xf32>
      %c0_23 = arith.constant 0 : index
      %c0_24 = arith.constant 0 : index
      %30 = vector.load %arg5[%c0_23, %c0_24] : memref<2x128xf32, #tpu.memory_space<vmem>>, vector<2x128xf32>
      tpu.vector_store %arg5[%c0_23, %c0_24], %29 {strides = array<i32>} : memref<2x128xf32, #tpu.memory_space<vmem>>, vector<2x128xf32>,
    } else {
    }
    %c0_18 = arith.constant 0 : index
    %c0_19 = arith.constant 0 : index
    %26 = vector.load %arg5[%c0_18, %c0_19] : memref<2x128xf32, #tpu.memory_space<vmem>>, vector<2x128xf32>
    %27 = arith.addf %26, %22 : vector<2x128xf32>
    %c0_20 = arith.constant 0 : index
    %c0_21 = arith.constant 0 : index
    %28 = vector.load %arg5[%c0_20, %c0_21] : memref<2x128xf32, #tpu.memory_space<vmem>>, vector<2x128xf32>
    tpu.vector_store %arg5[%c0_20, %c0_21], %27 {strides = array<i32>} : memref<2x128xf32, #tpu.memory_space<vmem>>, vector<2x128xf32>,
    return
  }
  func.func @transform_0(%arg0: i32, %arg1: i32) -> (i32, i32) {
    %c1_i32 = arith.constant 1 : i32
    %0 = arith.muli %arg0, %c1_i32 : i32
    %1 = arith.addi %0, %arg1 : i32
    %c0_i32 = arith.constant 0 : i32
    %c0_i32_0 = arith.constant 0 : i32
    return %1, %c0_i32 : i32, i32
  }
  func.func @transform_1(%arg0: i32, %arg1: i32) -> (i32, i32, i32) {
    %c0_i32 = arith.constant 0 : i32
    %c0_i32_0 = arith.constant 0 : i32
    %c0_i32_1 = arith.constant 0 : i32
    %c0_i32_2 = arith.constant 0 : i32
    return %c0_i32, %c0_i32_0, %c0_i32_1 : i32, i32, i32
  }
  func.func @transform_2(%arg0: i32, %arg1: i32) -> (i32, i32) {
    %c1_i32 = arith.constant 1 : i32
    %0 = arith.muli %arg0, %c1_i32 : i32
    %1 = arith.addi %0, %arg1 : i32
    %c0_i32 = arith.constant 0 : i32
    %c0_i32_0 = arith.constant 0 : i32
    return %1, %c0_i32 : i32, i32
  }
  func.func @transform_3(%arg0: i32, %arg1: i32) -> (i32, i32) {
    %c0_i32 = arith.constant 0 : i32
    %c0_i32_0 = arith.constant 0 : i32
    return %c0_i32, %arg0 : i32, i32
  }
}

</mosaic_0001>

<bundles_post_ra>
// kernel: down_forward.3
= control target key start
LH: loop header
LB: loop body
LE: loop exit
PB: predicated region body
PF: predicated region fallthrough
CT: control target
= control target key end

     0   :  { %s697_s12 = smov 0   ;;  %s699_s13 = smov 0   ;;  %s814_s0 = inlined_call_operand.vmem [shape: f32[160,12], index: 0, kind: input, shape index: {}]   ;;  %s815_s1 = inlined_call_operand.vmem [shape: f32[3,12,128], index: 1, kind: input, shape index: {}]   ;;  %s816_s2 = inlined_call_operand.vmem [shape: f32[128,128], index: 2, kind: output, shape index: {0}]   ;;  %s817_s3 = inlined_call_operand.vmem [shape: f32[2,256], index: 3, kind: output, shape index: {1}]  }
   0x1   :  { %s701_s14 = smov 0  }
   0x2 LB: > { %s26_s15 = sadd.s32 1, %s670_s13  ;;  %p583_p0 = scmp.ge.s32.totalorder %s674_s14, 1  ;;  %s674_s14 = sphi %s701_s14, %s14_s14   ;;  %s670_s13 = sphi %s699_s13, %s819_s13   ;;  %s666_s12 = sphi %s697_s12, %s818_s12  }
   0x3   : > { %p28_p1 = scmp.ge.s32.totalorder %s26_s15, 2  ;;  %p159_p2 = scmp.lt.s32.totalorder %s674_s14, 3 }
   0x5   : > { %s821_s15 = smov (%p28_p1, %s26_s15), 0  ;;  %p160_p3 = pnand %p583_p0, %p159_p2 }
   0x6   : > { %s190_s24 = smul.u32 (!%p160_p3), 10, %s666_s12  ;;  %s585_s6 = sshll.u32 (!%p160_p3), %s666_s12, 3 }
   0x7   : > { %163 = sbr.rel (%p160_p3) target bundleno = 215 (0xd7), region = 28  ;;  %p199_p5 = scmp.lt.s32.totalorder (!%p160_p3), %s585_s6, 15 }
   0x8   : > { %p191_p4 = scmp.lt.s32.totalorder (!%p160_p3), %s190_s24, 19  ;;  %p205_p6 = scmp.lt.s32.totalorder (!%p160_p3), %s666_s12, 1 }
   0xc   : > { %v589_v0 = vld [vmem:[%s815_s1 + $0x18] sm:$0xf]  ;;  %vm248_vm0 = vcmask 1043456   ;;  %v609_v1 = vld [vmem:[%s815_s1 + $0x28] sm:$0xf]  ;;  %v588_v2 = vld [vmem:[%s815_s1 + $0x10] sm:$0xff] }
   0xd   : > { %621 = vmatpush.msk.msra.mxu3 %vm248_vm0, %v589_v0  ;;  %610 = vmatpush.msk.msra.mxu2 %vm248_vm0, %v609_v1  ;;  %v608_v3 = vld [vmem:[%s815_s1 + $0x20] sm:$0xff]  ;;  %v218_v4 = vld [vmem:[%s815_s1 + $0x8] sm:$0xf]  ;;  %s823_s24 = smov (!%p191_p4, %s190_s24), 19  ;;  %vm223_vm1 = vcmask 97280   ;;  %s825_s6 = smov (!%p199_p5, %s585_s6), 15 }
   0xe   : > { %v217_v5 = vld [vmem:[%s815_s1] sm:$0xff]  ;;  %590 = vmatpush.msk.msra.mxu0 %vm248_vm0, %v589_v0  ;;  %599 = vmatpush.msk.msra.mxu1 %vm248_vm0, %v218_v4  ;;  %s584_s29 = sshll.u32 %s823_s24, 3  ;;  %s586_s7 = sshll.u32 %s825_s6, 3  ;;  %v676_v40 = vmov 0.0   ;;  %vm469_vm2 = vcmask 1040384  }
   0xf   : > { %622 = vmatpush.msra.mxu3 %v588_v2  ;;  %393 = vmatpush.msra.mxu2 %v608_v3  ;;  %s744_s5 = scalar_lea.vmem %s814_s0, %s584_s29  ;;  %s785_s10 = scalar_lea.vmem %s816_s2, %s586_s7 }
  0x10   : > { %267 = vmatpush.msra.mxu0 %v588_v2  ;;  %314 = vmatpush.msra.mxu1 %v217_v5  ;;  %v216_v6 = vld [vmem:[%s744_s5 + $0x38] sm:$0xff]  ;;  %v340_v7 = vld [vmem:[%s744_s5 + $0x10] sm:$0xff]  ;;  %v210_v8 = vld [vmem:[%s744_s5 + $0x8] sm:$0xff]  ;;  %s827_s12 = smov (!%p205_p6, %s666_s12), 1 }
  0x11   : > { %623 = vmatpush.msk.msrb.mxu3 %vm248_vm0, %v218_v4  ;;  %611 = vmatmul.msk.f32.vlgmr.msra.gmra.mxu2 %vm223_vm1, %v340_v7  ;;  %v209_v9 = vld [vmem:[%s744_s5] sm:$0xff]  ;;  %v341_v11 = vld [vmem:[%s744_s5 + $0x18] sm:$0xff]  ;;  %v215_v12 = vld [vmem:[%s744_s5 + $0x30] sm:$0xff]  ;;  %s587_s11 = sshll.u32 %s827_s12, 1 }
  0x12   : > { %597 = vmatmul.msk.f32.vlgmr.msra.gmra.mxu3 %vm223_vm1, %v216_v6  ;;  %591 = vmatmul.msk.f32.vlgmr.msra.gmra.mxu0 %vm223_vm1, %v210_v8  ;;  %v219_v10 = vld [vmem:[%s744_s5 + $0x40] sm:$0xff]  ;;  %v343_v14 = vld [vmem:[%s744_s5 + $0x28] sm:$0xff]  ;;  %s795_s18 = scalar_lea.vmem %s817_s3, %s587_s11 }
  0x13   : > { %624 = vmatpush.msrb.mxu3 %v217_v5  ;;  %600 = vmatmul.msk.f32.vlgmr.msra.gmra.mxu1 %vm223_vm1, %v209_v9  ;;  %v342_v13 = vld [vmem:[%s744_s5 + $0x20] sm:$0xff]  ;;  %v347_v15 = vld [vmem:[%s744_s5 + $0x48] sm:$0xff]  ;;  %476 = vst [vmem:[%s795_s18] sm:$0x3] %v676_v40 }
  0x15   : > { %625 = vmatpush.msk.msra.mxu3 %vm248_vm0, %v609_v1 }
  0x17   : > { %626 = vmatpush.msra.mxu3 %v608_v3 }
  0x19   : > { %612 = vmatmul.msk.f32.gmra.mxu2 %vm223_vm1, %v341_v11 }
  0x1a   : > { %598 = vmatmul.msk.f32.gmra.mxu3 %vm223_vm1, %v219_v10  ;;  %592 = vmatmul.msk.f32.gmra.mxu0 %vm223_vm1, %v340_v7 }
  0x1b   : > { %601 = vmatmul.msk.f32.gmra.mxu1 %vm223_vm1, %v210_v8 }
  0x21   : > { %613 = vmatmul.msk.f32.gmra.mxu2 %vm223_vm1, %v342_v13 }
  0x22   : > { %606 = vmatmul.msk.f32.vlgmr.msrb.gmra.mxu3 %vm223_vm1, %v215_v12  ;;  %593 = vmatmul.msk.f32.gmra.mxu0 %vm223_vm1, %v341_v11 }
  0x23   : > { %602 = vmatmul.msk.f32.gmra.mxu1 %vm223_vm1, %v340_v7 }
  0x29   : > { %614 = vmatmul.msk.f32.gmra.mxu2 %vm223_vm1, %v343_v14 }
  0x2a   : > { %607 = vmatmul.msk.f32.gmra.mxu3 %vm223_vm1, %v216_v6  ;;  %594 = vmatmul.msk.f32.gmra.mxu0 %vm223_vm1, %v342_v13 }
  0x2b   : > { %603 = vmatmul.msk.f32.gmra.mxu1 %vm223_vm1, %v341_v11 }
  0x31   : > { %615 = vmatmul.msk.f32.gmra.mxu2 %vm223_vm1, %v215_v12 }
  0x32   : > { %617 = vmatmul.msk.f32.vlgmr.msra.gmra.mxu3 %vm223_vm1, %v219_v10  ;;  %595 = vmatmul.msk.f32.gmra.mxu0 %vm223_vm1, %v343_v14 }
  0x33   : > { %604 = vmatmul.msk.f32.gmra.mxu1 %vm223_vm1, %v342_v13 }
  0x39   : > { %616 = vmatmul.msk.f32.gmra.mxu2 %vm223_vm1, %v216_v6 }
  0x3a   : > { %618 = vmatmul.msk.f32.gmra.mxu3 %vm223_vm1, %v347_v15  ;;  %596 = vmatmul.msk.f32.gmra.mxu0 %vm223_vm1, %v215_v12 }
  0x3b   : > { %605 = vmatmul.msk.f32.gmra.mxu1 %vm223_vm1, %v343_v14 }
  0x8f   : > { %v269_v16 = vpop.f32.mrf.mxu0 }
  0x90   : > { %v316_v17 = vpop.f32.mrf.mxu1 }
  0x91   : > { %v317_v18 = vadd.f32 %v316_v17, %v269_v16 }
  0x94   : > { %v395_v20 = vpop.f32.mrf.mxu2 }
  0x95   : > { %v287_v19 = vpop.f32.mrf.mxu3  ;;  %v419_v21 = vadd.f32 %v395_v20, %v317_v18 }
  0x97   : > { %427 = vst [vmem:[%s785_s10] sm:$0xff] %v419_v21  ;;  %v272_v22 = vpop.f32.mrf.mxu0  ;;  %v448_v50 = vmul.f32 %v419_v21, %v419_v21 }
  0x98   : > { %v319_v23 = vpop.f32.mrf.mxu1 }
  0x99   : > { %v320_v24 = vadd.f32 %v319_v23, %v272_v22 }
  0x9c   : > { %v398_v26 = vpop.f32.mrf.mxu2 }
  0x9d   : > { %v290_v25 = vpop.f32.mrf.mxu3  ;;  %v420_v27 = vadd.f32 %v398_v26, %v320_v24 }
  0x9f   : > { %428 = vst [vmem:[%s785_s10 + $0x8] sm:$0xff] %v420_v27  ;;  %v275_v28 = vpop.f32.mrf.mxu0  ;;  %v449_v47 = vmul.f32 %v420_v27, %v420_v27  ;;  %v435_v51 = vadd.f32 %v420_v27, %v419_v21  ;;  %v477_v27 = vld [vmem:[%s795_s18] sm:$0x3] }
  0xa0   : > { %v322_v29 = vpop.f32.mrf.mxu1 }
  0xa1   : > { %v323_v30 = vadd.f32 %v322_v29, %v275_v28  ;;  %v456_v55 = vadd.f32 %v449_v47, %v448_v50 }
  0xa4   : > { %v401_v32 = vpop.f32.mrf.mxu2 }
  0xa5   : > { %v334_v31 = vpop.f32.mrf.mxu3  ;;  %v421_v33 = vadd.f32 %v401_v32, %v323_v30 }
  0xa6   : > { %v335_v44 = vadd.f32 %v334_v31, %v287_v19 }
  0xa7   : > { %429 = vst [vmem:[%s785_s10 + $0x10] sm:$0xff] %v421_v33  ;;  %v278_v34 = vpop.f32.mrf.mxu0  ;;  %v450_v52 = vmul.f32 %v421_v33, %v421_v33  ;;  %v436_v56 = vadd.f32 %v435_v51, %v421_v33 }
  0xa8   : > { %v325_v35 = vpop.f32.mrf.mxu1 }
  0xa9   : > { %v326_v36 = vadd.f32 %v325_v35, %v278_v34  ;;  %v457_v59 = vadd.f32 %v456_v55, %v450_v52 }
  0xac   : > { %v404_v38 = vpop.f32.mrf.mxu2 }
  0xad   : > { %v337_v37 = vpop.f32.mrf.mxu3  ;;  %v422_v39 = vadd.f32 %v404_v38, %v326_v36 }
  0xae   : > { %v338_v60 = vadd.f32 %v337_v37, %v290_v25 }
  0xaf   : > { %430 = vst [vmem:[%s785_s10 + $0x18] sm:$0xff] %v422_v39  ;;  %v281_v41 = vpop.f32.mrf.mxu0  ;;  %v451_v57 = vmul.f32 %v422_v39, %v422_v39  ;;  %v437_v61 = vadd.f32 %v436_v56, %v422_v39 }
  0xb0   : > { %v328_v42 = vpop.f32.mrf.mxu1 }
  0xb1   : > { %v329_v43 = vadd.f32 %v328_v42, %v281_v41  ;;  %v458_v1 = vadd.f32 %v457_v59, %v451_v57 }
  0xb4   : > { %v407_v45 = vpop.f32.mrf.mxu2 }
  0xb5   : > { %v413_v46 = vpop.f32.mrf.mxu3  ;;  %v423_v48 = vadd.f32 %v407_v45, %v329_v43 }
  0xb6   : > { %v425_v49 = vadd.f32 %v413_v46, %v335_v44 }
  0xb7   : > { %431 = vst [vmem:[%s785_s10 + $0x20] sm:$0xff] %v423_v48  ;;  %v284_v53 = vpop.f32.mrf.mxu0  ;;  %v452_v62 = vmul.f32 %v423_v48, %v423_v48  ;;  %v438_v2 = vadd.f32 %v437_v61, %v423_v48 }
  0xb8   : > { %v331_v54 = vpop.f32.mrf.mxu1  ;;  %433 = vst [vmem:[%s785_s10 + $0x30] sm:$0xff] %v425_v49  ;;  %v454_v8 = vmul.f32 %v425_v49, %v425_v49 }
  0xb9   : > { %v332_v58 = vadd.f32 %v331_v54, %v284_v53  ;;  %v459_v5 = vadd.f32 %v458_v1, %v452_v62 }
  0xbc   : > { %v410_v63 = vpop.f32.mrf.mxu2 }
  0xbd   : > { %v416_v0 = vpop.f32.mrf.mxu3  ;;  %v424_v3 = vadd.f32 %v410_v63, %v332_v58 }
  0xbe   : > { %v426_v4 = vadd.f32 %v416_v0, %v338_v60 }
  0xbf   : > { %432 = vst [vmem:[%s785_s10 + $0x28] sm:$0xff] %v424_v3  ;;  %v439_v6 = vadd.f32 %v438_v2, %v424_v3  ;;  %v453_v7 = vmul.f32 %v424_v3, %v424_v3 }
  0xc0   : > { %434 = vst [vmem:[%s785_s10 + $0x38] sm:$0xff] %v426_v4  ;;  %v455_v12 = vmul.f32 %v426_v4, %v426_v4 }
  0xc1   : > { %v460_v9 = vadd.f32 %v459_v5, %v453_v7  ;;  %v440_v10 = vadd.f32 %v439_v6, %v425_v49 }
  0xc3   : > { %v441_v11 = vadd.f32 %v440_v10, %v426_v4  ;;  %v461_v13 = vadd.f32 %v460_v9, %v454_v8 }
  0xc5   : > { %v442_v14 = vrot.slane %v441_v11, 4  ;;  %v462_v15 = vadd.f32 %v461_v13, %v455_v12 }
  0xc7   : > { %v443_v16 = vadd.f32 %v442_v14, %v441_v11  ;;  %v463_v17 = vrot.slane %v462_v15, 4 }
  0xc9   : > { %v444_v18 = vrot.slane %v443_v16, 2  ;;  %v464_v19 = vadd.f32 %v463_v17, %v462_v15 }
  0xcb   : > { %v445_v20 = vadd.f32 %v444_v18, %v443_v16  ;;  %v465_v21 = vrot.slane %v464_v19, 2 }
  0xcd   : > { %v446_v22 = vrot.slane %v445_v20, 1  ;;  %v466_v23 = vadd.f32 %v465_v21, %v464_v19 }
  0xcf   : > { %v467_v24 = vrot.slane %v466_v23, 1  ;;  %v447_v25 = vadd.f32 %v446_v22, %v445_v20 }
  0xd1   : > { %v468_v26 = vadd.f32 %v467_v24, %v466_v23 }
  0xd3   : > { %v470_v28 = vsel %vm469_vm2, %v447_v25, %v468_v26 }
  0xd4   : > { %v478_v29 = vadd.f32 %v477_v27, %v470_v28 }
  0xd6   : > { %479 = vst [vmem:[%s795_s18] sm:$0x3] %v478_v29 }
  0xd7 PF: > { %s14_s14 = sadd.s32 1, %s674_s14   ;;  %s818_s12 = smov %s670_s13 }
  0xd8   : > { %p11_p7 = scmp.ge.s32.totalorder %s14_s14, 4   ;;  %s819_s13 = smov %s821_s15 }
  0xda   :  { %13 = sbr.rel (!%p11_p7) target bundleno = 2 (0x2), region = 76 }

// kernel: down_forward.5
= control target key start
LH: loop header
LB: loop body
LE: loop exit
PB: predicated region body
PF: predicated region fallthrough
CT: control target
= control target key end

     0   :  { %s248_s0 = inlined_call_operand.vmem [shape: f32[128,128], index: 0, kind: input, shape index: {}]   ;;  %s249_s1 = inlined_call_operand.vmem [shape: f32[1,128], index: 1, kind: input, shape index: {}]   ;;  %s250_s2 = inlined_call_operand.vmem [shape: f32[1,128], index: 2, kind: input, shape index: {}]   ;;  %s251_s3 = inlined_call_operand.vmem [shape: f32[128,128], index: 3, kind: output, shape index: {}]  }
   0x1   :  { %v14_v0 = vld [vmem:[%s248_s0] sm:$0xff]  ;;  %v15_v3 = vld [vmem:[%s248_s0 + $0x8] sm:$0xff]  ;;  %v16_v6 = vld [vmem:[%s248_s0 + $0x10] sm:$0xff] }
   0x2   :  { %v106_v1 = vld [vmem:[%s249_s1] ss:$0 sm:$0xff]  ;;  %v17_v7 = vld [vmem:[%s248_s0 + $0x18] sm:$0xff]  ;;  %v19_v12 = vld [vmem:[%s248_s0 + $0x28] sm:$0xff] }
   0x3   :  { %v137_v2 = vld [vmem:[%s250_s2] ss:$0 sm:$0xff]  ;;  %v34_v4 = vmul.f32 %v106_v1, %v14_v0  ;;  %v35_v5 = vmul.f32 %v106_v1, %v15_v3  ;;  %v36_v9 = vmul.f32 %v106_v1, %v16_v6  ;;  %v37_v10 = vmul.f32 %v106_v1, %v17_v7  ;;  %v20_v13 = vld [vmem:[%s248_s0 + $0x30] sm:$0xff]  ;;  %v21_v14 = vld [vmem:[%s248_s0 + $0x38] sm:$0xff] }
   0x4   :  { %v18_v8 = vld [vmem:[%s248_s0 + $0x20] sm:$0xff]  ;;  %v39_v17 = vmul.f32 %v106_v1, %v19_v12  ;;  %v40_v18 = vmul.f32 %v106_v1, %v20_v13  ;;  %v41_v22 = vmul.f32 %v106_v1, %v21_v14  ;;  %v23_v24 = vld [vmem:[%s248_s0 + $0x48] sm:$0xff]  ;;  %v24_v29 = vld [vmem:[%s248_s0 + $0x50] sm:$0xff] }
   0x5   :  { %v38_v11 = vmul.f32 %v106_v1, %v18_v8  ;;  %v54_v15 = vadd.f32 %v137_v2, %v34_v4  ;;  %v55_v16 = vadd.f32 %v137_v2, %v35_v5  ;;  %v56_v19 = vadd.f32 %v137_v2, %v36_v9  ;;  %v22_v23 = vld [vmem:[%s248_s0 + $0x40] sm:$0xff]  ;;  %v25_v30 = vld [vmem:[%s248_s0 + $0x58] sm:$0xff]  ;;  %v27_v35 = vld [vmem:[%s248_s0 + $0x68] sm:$0xff] }
   0x6   :  { %v57_v20 = vadd.f32 %v137_v2, %v37_v10  ;;  %v59_v27 = vadd.f32 %v137_v2, %v39_v17  ;;  %v60_v28 = vadd.f32 %v137_v2, %v40_v18  ;;  %v26_v31 = vld [vmem:[%s248_s0 + $0x60] sm:$0xff]  ;;  %v61_v34 = vadd.f32 %v137_v2, %v41_v22  ;;  %v28_v36 = vld [vmem:[%s248_s0 + $0x70] sm:$0xff]  ;;  %v29_v41 = vld [vmem:[%s248_s0 + $0x78] sm:$0xff] }
   0x7   :  { %v58_v21 = vadd.f32 %v137_v2, %v38_v11  ;;  %v70_v25 = vmax.f32 %v54_v15, 0.0  ;;  %v71_v26 = vmax.f32 %v55_v16, 0.0  ;;  %v72_v32 = vmax.f32 %v56_v19, 0.0 }
   0x8   :  { %v73_v33 = vmax.f32 %v57_v20, 0.0  ;;  %v75_v38 = vmax.f32 %v59_v27, 0.0  ;;  %v42_v39 = vmul.f32 %v106_v1, %v22_v23  ;;  %v43_v40 = vmul.f32 %v106_v1, %v23_v24 }
   0x9   :  { %86 = vst [vmem:[%s251_s3] sm:$0xff] %v70_v25  ;;  %v74_v37 = vmax.f32 %v58_v21, 0.0  ;;  %v76_v42 = vmax.f32 %v60_v28, 0.0  ;;  %v44_v43 = vmul.f32 %v106_v1, %v24_v29  ;;  %v45_v44 = vmul.f32 %v106_v1, %v25_v30 }
   0xa   :  { %87 = vst [vmem:[%s251_s3 + $0x8] sm:$0xff] %v71_v26  ;;  %v46_v45 = vmul.f32 %v106_v1, %v26_v31  ;;  %v62_v46 = vadd.f32 %v137_v2, %v42_v39  ;;  %v63_v47 = vadd.f32 %v137_v2, %v43_v40  ;;  %v47_v48 = vmul.f32 %v106_v1, %v27_v35 }
   0xb   :  { %88 = vst [vmem:[%s251_s3 + $0x10] sm:$0xff] %v72_v32  ;;  %v48_v49 = vmul.f32 %v106_v1, %v28_v36  ;;  %v77_v50 = vmax.f32 %v61_v34, 0.0  ;;  %v64_v51 = vadd.f32 %v137_v2, %v44_v43  ;;  %v65_v52 = vadd.f32 %v137_v2, %v45_v44 }
   0xc   :  { %89 = vst [vmem:[%s251_s3 + $0x18] sm:$0xff] %v73_v33  ;;  %v49_v53 = vmul.f32 %v106_v1, %v29_v41  ;;  %v78_v54 = vmax.f32 %v62_v46, 0.0  ;;  %v66_v55 = vadd.f32 %v137_v2, %v46_v45  ;;  %v79_v56 = vmax.f32 %v63_v47, 0.0 }
   0xd   :  { %90 = vst [vmem:[%s251_s3 + $0x20] sm:$0xff] %v74_v37  ;;  %v67_v57 = vadd.f32 %v137_v2, %v47_v48  ;;  %v80_v58 = vmax.f32 %v64_v51, 0.0  ;;  %v68_v59 = vadd.f32 %v137_v2, %v48_v49  ;;  %v81_v60 = vmax.f32 %v65_v52, 0.0 }
   0xe   :  { %91 = vst [vmem:[%s251_s3 + $0x28] sm:$0xff] %v75_v38  ;;  %v69_v61 = vadd.f32 %v137_v2, %v49_v53  ;;  %v82_v62 = vmax.f32 %v66_v55, 0.0 }
   0xf   :  { %92 = vst [vmem:[%s251_s3 + $0x30] sm:$0xff] %v76_v42  ;;  %v83_v63 = vmax.f32 %v67_v57, 0.0  ;;  %v84_v0 = vmax.f32 %v68_v59, 0.0 }
  0x10   :  { %93 = vst [vmem:[%s251_s3 + $0x38] sm:$0xff] %v77_v50  ;;  %v85_v1 = vmax.f32 %v69_v61, 0.0 }
  0x11   :  { %94 = vst [vmem:[%s251_s3 + $0x40] sm:$0xff] %v78_v54 }
  0x12   :  { %95 = vst [vmem:[%s251_s3 + $0x48] sm:$0xff] %v79_v56 }
  0x13   :  { %96 = vst [vmem:[%s251_s3 + $0x50] sm:$0xff] %v80_v58 }
  0x14   :  { %97 = vst [vmem:[%s251_s3 + $0x58] sm:$0xff] %v81_v60 }
  0x15   :  { %98 = vst [vmem:[%s251_s3 + $0x60] sm:$0xff] %v82_v62 }
  0x16   :  { %99 = vst [vmem:[%s251_s3 + $0x68] sm:$0xff] %v83_v63 }
  0x17   :  { %100 = vst [vmem:[%s251_s3 + $0x70] sm:$0xff] %v84_v0 }
  0x18   :  { %101 = vst [vmem:[%s251_s3 + $0x78] sm:$0xff] %v85_v1 }

// kernel: down_forward.4
= control target key start
LH: loop header
LB: loop body
LE: loop exit
PB: predicated region body
PF: predicated region fallthrough
CT: control target
= control target key end

     0   :  { %s692_s12 = smov 0   ;;  %s694_s13 = smov 0   ;;  %s812_s0 = inlined_call_operand.vmem [shape: f32[160,24], index: 0, kind: input, shape index: {}]   ;;  %s813_s1 = inlined_call_operand.vmem [shape: f32[3,24,128], index: 1, kind: input, shape index: {}]   ;;  %s814_s2 = inlined_call_operand.vmem [shape: f32[128,128], index: 2, kind: output, shape index: {0}]   ;;  %s815_s3 = inlined_call_operand.vmem [shape: f32[2,256], index: 3, kind: output, shape index: {1}]  }
   0x1   :  { %s696_s14 = smov 0  }
   0x2 LB: > { %s26_s15 = sadd.s32 1, %s665_s13  ;;  %p576_p0 = scmp.ge.s32.totalorder %s669_s14, 1  ;;  %s669_s14 = sphi %s696_s14, %s14_s14   ;;  %s665_s13 = sphi %s694_s13, %s817_s13   ;;  %s661_s12 = sphi %s692_s12, %s816_s12  }
   0x3   : > { %p28_p1 = scmp.ge.s32.totalorder %s26_s15, 2  ;;  %p159_p2 = scmp.lt.s32.totalorder %s669_s14, 3 }
   0x5   : > { %s819_s15 = smov (%p28_p1, %s26_s15), 0  ;;  %p160_p3 = pnand %p576_p0, %p159_p2 }
   0x6   : > { %s190_s22 = smul.u32 (!%p160_p3), 10, %s661_s12  ;;  %s578_s16 = sshll.u32 (!%p160_p3), %s661_s12, 3 }
   0x7   : > { %163 = sbr.rel (%p160_p3) target bundleno = 217 (0xd9), region = 28  ;;  %p199_p5 = scmp.lt.s32.totalorder (!%p160_p3), %s578_s16, 15 }
   0x8   : > { %p191_p4 = scmp.lt.s32.totalorder (!%p160_p3), %s190_s22, 19  ;;  %p205_p6 = scmp.lt.s32.totalorder (!%p160_p3), %s661_s12, 1 }
   0xc   : > { %v583_v0 = vld [vmem:[%s813_s1 + $0x28] sm:$0xff]  ;;  %v602_v1 = vld [vmem:[%s813_s1 + $0x40] sm:$0xff]  ;;  %v601_v3 = vld [vmem:[%s813_s1 + $0x38] sm:$0xff]  ;;  %s821_s22 = smov (!%p191_p4, %s190_s22), 19  ;;  %vm225_vm0 = vcmask 195584   ;;  %s823_s16 = smov (!%p199_p5, %s578_s16), 15 }
   0xd   : > { %v582_v2 = vld [vmem:[%s813_s1 + $0x20] sm:$0xff]  ;;  %613 = vmatpush.msra.mxu3 %v583_v0  ;;  %384 = vmatpush.msra.mxu2 %v602_v1  ;;  %v219_v4 = vld [vmem:[%s813_s1 + $0x10] sm:$0xff]  ;;  %v581_v5 = vld [vmem:[%s813_s1 + $0x18] sm:$0xff]  ;;  %s577_s8 = sshll.u32 %s821_s22, 3  ;;  %s579_s17 = sshll.u32 %s823_s16, 3  ;;  %v671_v43 = vmov 0.0  }
   0xe   : > { %263 = vmatpush.msra.mxu0 %v583_v0  ;;  %307 = vmatpush.msra.mxu1 %v219_v4  ;;  %v600_v6 = vld [vmem:[%s813_s1 + $0x30] sm:$0xff]  ;;  %v218_v7 = vld [vmem:[%s813_s1 + $0x8] sm:$0xff]  ;;  %v217_v8 = vld [vmem:[%s813_s1] sm:$0xff]  ;;  %s743_s11 = scalar_lea.vmem %s812_s0, %s577_s8  ;;  %s783_s20 = scalar_lea.vmem %s814_s2, %s579_s17  ;;  %vm462_vm1 = vcmask 1040384  }
   0xf   : > { %614 = vmatpush.msra.mxu3 %v582_v2  ;;  %385 = vmatpush.msra.mxu2 %v601_v3  ;;  %v216_v9 = vld [vmem:[%s743_s11 + $0x38] sm:$0xff]  ;;  %v335_v10 = vld [vmem:[%s743_s11 + $0x10] sm:$0xff]  ;;  %v210_v11 = vld [vmem:[%s743_s11 + $0x8] sm:$0xff]  ;;  %s825_s12 = smov (!%p205_p6, %s661_s12), 1 }
  0x10   : > { %264 = vmatpush.msra.mxu0 %v582_v2  ;;  %308 = vmatpush.msra.mxu1 %v218_v7  ;;  %v209_v12 = vld [vmem:[%s743_s11] sm:$0xff]  ;;  %v336_v14 = vld [vmem:[%s743_s11 + $0x18] sm:$0xff]  ;;  %v215_v15 = vld [vmem:[%s743_s11 + $0x30] sm:$0xff]  ;;  %s580_s21 = sshll.u32 %s825_s12, 1 }
  0x11   : > { %615 = vmatpush.msra.mxu3 %v581_v5  ;;  %386 = vmatpush.msra.mxu2 %v600_v6  ;;  %v220_v13 = vld [vmem:[%s743_s11 + $0x40] sm:$0xff]  ;;  %v338_v17 = vld [vmem:[%s743_s11 + $0x28] sm:$0xff]  ;;  %s793_s24 = scalar_lea.vmem %s815_s3, %s580_s21 }
  0x12   : > { %265 = vmatpush.msra.mxu0 %v581_v5  ;;  %309 = vmatpush.msra.mxu1 %v217_v8  ;;  %v337_v16 = vld [vmem:[%s743_s11 + $0x20] sm:$0xff]  ;;  %v342_v18 = vld [vmem:[%s743_s11 + $0x48] sm:$0xff]  ;;  %469 = vst [vmem:[%s793_s24] sm:$0x3] %v671_v43 }
  0x13   : > { %616 = vmatpush.msrb.mxu3 %v219_v4  ;;  %603 = vmatmul.msk.f32.vlgmr.msra.gmra.mxu2 %vm225_vm0, %v335_v10 }
  0x14   : > { %590 = vmatmul.msk.f32.vlgmr.msra.gmra.mxu3 %vm225_vm0, %v216_v9  ;;  %584 = vmatmul.msk.f32.vlgmr.msra.gmra.mxu0 %vm225_vm0, %v210_v11 }
  0x15   : > { %592 = vmatmul.msk.f32.vlgmr.msra.gmra.mxu1 %vm225_vm0, %v209_v12  ;;  %617 = vmatpush.msrb.mxu3 %v218_v7 }
  0x17   : > { %618 = vmatpush.msrb.mxu3 %v217_v8 }
  0x19   : > { %619 = vmatpush.msra.mxu3 %v602_v1 }
  0x1b   : > { %620 = vmatpush.msra.mxu3 %v601_v3  ;;  %604 = vmatmul.msk.f32.gmra.mxu2 %vm225_vm0, %v336_v14 }
  0x1c   : > { %591 = vmatmul.msk.f32.gmra.mxu3 %vm225_vm0, %v220_v13  ;;  %585 = vmatmul.msk.f32.gmra.mxu0 %vm225_vm0, %v335_v10 }
  0x1d   : > { %593 = vmatmul.msk.f32.gmra.mxu1 %vm225_vm0, %v210_v11  ;;  %621 = vmatpush.msra.mxu3 %v600_v6 }
  0x23   : > { %605 = vmatmul.msk.f32.gmra.mxu2 %vm225_vm0, %v337_v16 }
  0x24   : > { %598 = vmatmul.msk.f32.vlgmr.msrb.gmra.mxu3 %vm225_vm0, %v215_v15  ;;  %586 = vmatmul.msk.f32.gmra.mxu0 %vm225_vm0, %v336_v14 }
  0x25   : > { %594 = vmatmul.msk.f32.gmra.mxu1 %vm225_vm0, %v335_v10 }
  0x2b   : > { %606 = vmatmul.msk.f32.gmra.mxu2 %vm225_vm0, %v338_v17 }
  0x2c   : > { %599 = vmatmul.msk.f32.gmra.mxu3 %vm225_vm0, %v216_v9  ;;  %587 = vmatmul.msk.f32.gmra.mxu0 %vm225_vm0, %v337_v16 }
  0x2d   : > { %595 = vmatmul.msk.f32.gmra.mxu1 %vm225_vm0, %v336_v14 }
  0x33   : > { %607 = vmatmul.msk.f32.gmra.mxu2 %vm225_vm0, %v215_v15 }
  0x34   : > { %609 = vmatmul.msk.f32.vlgmr.msra.gmra.mxu3 %vm225_vm0, %v220_v13  ;;  %588 = vmatmul.msk.f32.gmra.mxu0 %vm225_vm0, %v338_v17 }
  0x35   : > { %596 = vmatmul.msk.f32.gmra.mxu1 %vm225_vm0, %v337_v16 }
  0x3b   : > { %608 = vmatmul.msk.f32.gmra.mxu2 %vm225_vm0, %v216_v9 }
  0x3c   : > { %610 = vmatmul.msk.f32.gmra.mxu3 %vm225_vm0, %v342_v18  ;;  %589 = vmatmul.msk.f32.gmra.mxu0 %vm225_vm0, %v215_v15 }
  0x3d   : > { %597 = vmatmul.msk.f32.gmra.mxu1 %vm225_vm0, %v338_v17 }
  0x91   : > { %v267_v19 = vpop.f32.mrf.mxu0 }
  0x92   : > { %v311_v20 = vpop.f32.mrf.mxu1 }
  0x93   : > { %v312_v21 = vadd.f32 %v311_v20, %v267_v19 }
  0x96   : > { %v388_v23 = vpop.f32.mrf.mxu2 }
  0x97   : > { %v285_v22 = vpop.f32.mrf.mxu3  ;;  %v412_v24 = vadd.f32 %v388_v23, %v312_v21 }
  0x99   : > { %420 = vst [vmem:[%s783_s20] sm:$0xff] %v412_v24  ;;  %v270_v25 = vpop.f32.mrf.mxu0  ;;  %v441_v53 = vmul.f32 %v412_v24, %v412_v24 }
  0x9a   : > { %v314_v26 = vpop.f32.mrf.mxu1 }
  0x9b   : > { %v315_v27 = vadd.f32 %v314_v26, %v270_v25 }
  0x9e   : > { %v391_v29 = vpop.f32.mrf.mxu2 }
  0x9f   : > { %v288_v28 = vpop.f32.mrf.mxu3  ;;  %v413_v30 = vadd.f32 %v391_v29, %v315_v27 }
  0xa1   : > { %421 = vst [vmem:[%s783_s20 + $0x8] sm:$0xff] %v413_v30  ;;  %v273_v31 = vpop.f32.mrf.mxu0  ;;  %v442_v50 = vmul.f32 %v413_v30, %v413_v30  ;;  %v428_v54 = vadd.f32 %v413_v30, %v412_v24  ;;  %v470_v30 = vld [vmem:[%s793_s24] sm:$0x3] }
  0xa2   : > { %v317_v32 = vpop.f32.mrf.mxu1 }
  0xa3   : > { %v318_v33 = vadd.f32 %v317_v32, %v273_v31  ;;  %v449_v58 = vadd.f32 %v442_v50, %v441_v53 }
  0xa6   : > { %v394_v35 = vpop.f32.mrf.mxu2 }
  0xa7   : > { %v329_v34 = vpop.f32.mrf.mxu3  ;;  %v414_v36 = vadd.f32 %v394_v35, %v318_v33 }
  0xa8   : > { %v330_v47 = vadd.f32 %v329_v34, %v285_v22 }
  0xa9   : > { %422 = vst [vmem:[%s783_s20 + $0x10] sm:$0xff] %v414_v36  ;;  %v276_v37 = vpop.f32.mrf.mxu0  ;;  %v443_v55 = vmul.f32 %v414_v36, %v414_v36  ;;  %v429_v59 = vadd.f32 %v428_v54, %v414_v36 }
  0xaa   : > { %v320_v38 = vpop.f32.mrf.mxu1 }
  0xab   : > { %v321_v39 = vadd.f32 %v320_v38, %v276_v37  ;;  %v450_v62 = vadd.f32 %v449_v58, %v443_v55 }
  0xae   : > { %v397_v41 = vpop.f32.mrf.mxu2 }
  0xaf   : > { %v332_v40 = vpop.f32.mrf.mxu3  ;;  %v415_v42 = vadd.f32 %v397_v41, %v321_v39 }
  0xb0   : > { %v333_v63 = vadd.f32 %v332_v40, %v288_v28 }
  0xb1   : > { %423 = vst [vmem:[%s783_s20 + $0x18] sm:$0xff] %v415_v42  ;;  %v279_v44 = vpop.f32.mrf.mxu0  ;;  %v444_v60 = vmul.f32 %v415_v42, %v415_v42  ;;  %v430_v0 = vadd.f32 %v429_v59, %v415_v42 }
  0xb2   : > { %v323_v45 = vpop.f32.mrf.mxu1 }
  0xb3   : > { %v324_v46 = vadd.f32 %v323_v45, %v279_v44  ;;  %v451_v4 = vadd.f32 %v450_v62, %v444_v60 }
  0xb6   : > { %v400_v48 = vpop.f32.mrf.mxu2 }
  0xb7   : > { %v406_v49 = vpop.f32.mrf.mxu3  ;;  %v416_v51 = vadd.f32 %v400_v48, %v324_v46 }
  0xb8   : > { %v418_v52 = vadd.f32 %v406_v49, %v330_v47 }
  0xb9   : > { %424 = vst [vmem:[%s783_s20 + $0x20] sm:$0xff] %v416_v51  ;;  %v282_v56 = vpop.f32.mrf.mxu0  ;;  %v445_v1 = vmul.f32 %v416_v51, %v416_v51  ;;  %v431_v5 = vadd.f32 %v430_v0, %v416_v51 }
  0xba   : > { %v326_v57 = vpop.f32.mrf.mxu1  ;;  %426 = vst [vmem:[%s783_s20 + $0x30] sm:$0xff] %v418_v52  ;;  %v447_v11 = vmul.f32 %v418_v52, %v418_v52 }
  0xbb   : > { %v327_v61 = vadd.f32 %v326_v57, %v282_v56  ;;  %v452_v8 = vadd.f32 %v451_v4, %v445_v1 }
  0xbe   : > { %v403_v2 = vpop.f32.mrf.mxu2 }
  0xbf   : > { %v409_v3 = vpop.f32.mrf.mxu3  ;;  %v417_v6 = vadd.f32 %v403_v2, %v327_v61 }
  0xc0   : > { %v419_v7 = vadd.f32 %v409_v3, %v333_v63 }
  0xc1   : > { %425 = vst [vmem:[%s783_s20 + $0x28] sm:$0xff] %v417_v6  ;;  %v432_v9 = vadd.f32 %v431_v5, %v417_v6  ;;  %v446_v10 = vmul.f32 %v417_v6, %v417_v6 }
  0xc2   : > { %427 = vst [vmem:[%s783_s20 + $0x38] sm:$0xff] %v419_v7  ;;  %v448_v15 = vmul.f32 %v419_v7, %v419_v7 }
  0xc3   : > { %v453_v12 = vadd.f32 %v452_v8, %v446_v10  ;;  %v433_v13 = vadd.f32 %v432_v9, %v418_v52 }
  0xc5   : > { %v434_v14 = vadd.f32 %v433_v13, %v419_v7  ;;  %v454_v16 = vadd.f32 %v453_v12, %v447_v11 }
  0xc7   : > { %v435_v17 = vrot.slane %v434_v14, 4  ;;  %v455_v18 = vadd.f32 %v454_v16, %v448_v15 }
  0xc9   : > { %v436_v19 = vadd.f32 %v435_v17, %v434_v14  ;;  %v456_v20 = vrot.slane %v455_v18, 4 }
  0xcb   : > { %v437_v21 = vrot.slane %v436_v19, 2  ;;  %v457_v22 = vadd.f32 %v456_v20, %v455_v18 }
  0xcd   : > { %v438_v23 = vadd.f32 %v437_v21, %v436_v19  ;;  %v458_v24 = vrot.slane %v457_v22, 2 }
  0xcf   : > { %v439_v25 = vrot.slane %v438_v23, 1  ;;  %v459_v26 = vadd.f32 %v458_v24, %v457_v22 }
  0xd1   : > { %v460_v27 = vrot.slane %v459_v26, 1  ;;  %v440_v28 = vadd.f32 %v439_v25, %v438_v23 }
  0xd3   : > { %v461_v29 = vadd.f32 %v460_v27, %v459_v26 }
  0xd5   : > { %v463_v31 = vsel %vm462_vm1, %v440_v28, %v461_v29 }
  0xd6   : > { %v471_v32 = vadd.f32 %v470_v30, %v463_v31 }
  0xd8   : > { %472 = vst [vmem:[%s793_s24] sm:$0x3] %v471_v32 }
  0xd9 PF: > { %s14_s14 = sadd.s32 1, %s669_s14   ;;  %s816_s12 = smov %s665_s13 }
  0xda   : > { %p11_p7 = scmp.ge.s32.totalorder %s14_s14, 4   ;;  %s817_s13 = smov %s819_s15 }
  0xdc   :  { %13 = sbr.rel (!%p11_p7) target bundleno = 2 (0x2), region = 76 }

</bundles_post_ra>
